<compile_context>
chip_gen: v7x
topology: tpu7x:2x2x1
jax: 0.10.0
libtpu: 0.0.40
codegen_flags: <defaults>
</compile_context>

<pallas_src>
import jax
import jax.numpy as jnp
from jax.experimental import pallas as pl
from jax.experimental.pallas import tpu as pltpu


def _round_up(x: int, m: int) -> int:
    return ((x + m - 1) // m) * m


def _linear_kernel(x_ref, w_ref, o_ref):
    # x_ref : (tm, C_in)      bf16 feature-row tile
    # w_ref : (C_in, C_out_p) bf16 transposed, lane-padded weight (resident)
    # o_ref : (tm, C_out_p)   f32 output tile (lane-dense: C_out_p % 128 == 0)
    o_ref[...] = jnp.dot(
        x_ref[...], w_ref[...], preferred_element_type=jnp.float32
    ).astype(o_ref.dtype)


def _linear_pallas(x_bf16, w_t_bf16, *, tm: int = 512):
    """x_bf16: (N, C_in) bf16; w_t_bf16: (C_in, C_out_p) bf16, C_out_p % 128 == 0.

    Returns (N, C_out_p) float32 = x @ w_t.
    """
    n, c_in = x_bf16.shape
    c_out_p = w_t_bf16.shape[1]

    # Clamp the row tile for small N (single grid step avoids per-step
    # overhead); keep it a multiple of 8 sublanes.  cdiv grid + partial last
    # block handles any N with no host-side padding of the features.
    tm_eff = min(tm, _round_up(n, 8))
    grid = (pl.cdiv(n, tm_eff),)

    return pl.pallas_call(
        _linear_kernel,
        out_shape=jax.ShapeDtypeStruct((n, c_out_p), jnp.float32),
        grid_spec=pltpu.PrefetchScalarGridSpec(
            num_scalar_prefetch=0,
            grid=grid,
            in_specs=[
                # tile feature rows; C_in is small, keep it whole (full dim)
                pl.BlockSpec((tm_eff, c_in), lambda i: (i, 0)),
                # constant index_map -> weight is fetched once and stays
                # resident in VMEM across all grid steps
                pl.BlockSpec((c_in, c_out_p), lambda i: (0, 0)),
            ],
            out_specs=pl.BlockSpec((tm_eff, c_out_p), lambda i: (i, 0)),
        ),
        compiler_params=pltpu.CompilerParams(
            # row axis is fully independent -> megacore / v7x 2-TC sharding
            dimension_semantics=("parallel",),
        ),
    )(x_bf16, w_t_bf16)


def sparse_tensor_linear(feats: jax.Array, weight: jax.Array, *, tm: int = 512):
    """feats: (N, C_in); weight: (C_out, C_in) as in nn.Linear (bias=False).

    Returns (N, C_out) float32 = feats @ weight.T
    """
    c_out = weight.shape[0]
    c_in = weight.shape[1]
    c_out_p = _round_up(c_out, 128)

    x = feats.astype(jnp.bfloat16)
    w_t = jnp.zeros((c_in, c_out_p), jnp.bfloat16).at[:, :c_out].set(
        weight.astype(jnp.bfloat16).T
    )

    out_p = _linear_pallas(x, w_t, tm=tm)
    return out_p[:, :c_out] if c_out_p != c_out else out_p


class SparseTensorLinearPallas:
    """Mirror of the PyTorch SparseTensorLinear module (bias=False)."""

    def __init__(self, in_channels: int, out_channels: int, key):
        # nn.Linear default init: U(-1/sqrt(fan_in), 1/sqrt(fan_in))
        bound = 1.0 / (in_channels ** 0.5)
        self.weight = jax.random.uniform(
            key, (out_channels, in_channels),
            minval=-bound, maxval=bound, dtype=jnp.float32,
        )
        self.in_channels = in_channels
        self.out_channels = out_channels
        # Cache the pre-transposed, lane-padded bf16 weight so no per-call
        # XLA transpose / pad ops are emitted outside the kernel.
        c_out_p = _round_up(out_channels, 128)
        self._w_t = jnp.zeros((in_channels, c_out_p), jnp.bfloat16).at[
            :, :out_channels
        ].set(self.weight.astype(jnp.bfloat16).T)

    def __call__(self, sp_feats: jax.Array, *, tm: int = 512):
        # TODO(synk): MinkowskiEngine coordinate-map reattachment
        # (assign_feats) is metadata-only glue; only the feature projection
        # carries compute and is done in the Pallas kernel.
        out_p = _linear_pallas(sp_feats.astype(jnp.bfloat16), self._w_t, tm=tm)
        if out_p.shape[1] != self.out_channels:
            out_p = out_p[:, : self.out_channels]
        return out_p


if __name__ == "__main__":
    key = jax.random.PRNGKey(0)
    k_feat, k_w = jax.random.split(key)

    n_points = 200        # not a multiple of 8 / tile -> exercises ragged block
    in_channels = 32
    out_channels = 64     # < 128 -> exercises lane-dense output padding path

    feats = jax.random.normal(k_feat, (n_points, in_channels), dtype=jnp.float32)

    module = SparseTensorLinearPallas(in_channels, out_channels, k_w)
    out = jax.block_until_ready(module(feats))

    # correctness check against plain JAX f32 reference (bf16 inputs with f32
    # accumulation -> loose tolerance, normal for a bf16 linear layer)
    ref = feats @ module.weight.T
    assert out.shape == (n_points, out_channels)
    assert out.dtype == jnp.float32
    assert jnp.allclose(out, ref, atol=5e-2, rtol=5e-2), float(
        jnp.max(jnp.abs(out - ref))
    )

    print("KERNEL_OK")
</pallas_src>

<mosaic_0001>
module attributes {stable_mosaic.version = 11 : i64} {
  func.func @_linear_kernel(%arg0: i32, %arg1: memref<200x32xbf16, #tpu.memory_space<vmem>>, %arg2: memref<32x128xbf16, #tpu.memory_space<vmem>>, %arg3: memref<200x128xf32, #tpu.memory_space<vmem>>) attributes {dimension_semantics = [#tpu.dimension_semantics<parallel>], iteration_bounds = array<i64: 1>, scalar_prefetch = 0 : i64, scratch_operands = 0 : i64, tpu.core_type = #tpu.core_type<tc>, window_params = [{transform_indices = @transform_0, window_bounds = array<i64: 200, 32>}, {pipeline_mode = #tpu.pipeline_mode<synchronous>, transform_indices = @transform_1, window_bounds = array<i64: 32, 128>}, {transform_indices = @transform_2, window_bounds = array<i64: 200, 128>}]} {
    %c0 = arith.constant 0 : index
    %c0_0 = arith.constant 0 : index
    %0 = vector.load %arg1[%c0, %c0_0] : memref<200x32xbf16, #tpu.memory_space<vmem>>, vector<200x32xbf16>
    %c0_1 = arith.constant 0 : index
    %c0_2 = arith.constant 0 : index
    %1 = vector.load %arg2[%c0_1, %c0_2] : memref<32x128xbf16, #tpu.memory_space<vmem>>, vector<32x128xbf16>
    %cst = arith.constant dense<0.000000e+00> : vector<200x128xf32>
    %2 = tpu.matmul %0, %1, %cst {dimension_numbers = #tpu.dot_dimension_numbers<[1], [0], [0], [1], [0, 0, 1, 1], [], []>} : vector<200x32xbf16>, vector<32x128xbf16>, vector<200x128xf32> -> vector<200x128xf32>
    %c0_3 = arith.constant 0 : index
    %c0_4 = arith.constant 0 : index
    %3 = vector.load %arg3[%c0_3, %c0_4] : memref<200x128xf32, #tpu.memory_space<vmem>>, vector<200x128xf32>
    tpu.vector_store %arg3[%c0_3, %c0_4], %2 {strides = array<i32>} : memref<200x128xf32, #tpu.memory_space<vmem>>, vector<200x128xf32>,
    return
  }
  func.func @transform_0(%arg0: i32) -> (i32, i32) {
    %c0_i32 = arith.constant 0 : i32
    %c0_i32_0 = arith.constant 0 : i32
    return %arg0, %c0_i32 : i32, i32
  }
  func.func @transform_1(%arg0: i32) -> (i32, i32) {
    %c0_i32 = arith.constant 0 : i32
    %c0_i32_0 = arith.constant 0 : i32
    %c0_i32_1 = arith.constant 0 : i32
    return %c0_i32, %c0_i32_0 : i32, i32
  }
  func.func @transform_2(%arg0: i32) -> (i32, i32) {
    %c0_i32 = arith.constant 0 : i32
    %c0_i32_0 = arith.constant 0 : i32
    return %arg0, %c0_i32 : i32, i32
  }
}

</mosaic_0001>

<bundles_post_ra>
// kernel: tpu_custom_call.1
= control target key start
LH: loop header
LB: loop body
LE: loop exit
PB: predicated region body
PF: predicated region fallthrough
CT: control target
= control target key end

     0   :  { %v481_v1 = vmov 0.0   ;;  %vm482_vm0 = vmmov 0   ;;  %vm117_vm1 = vcmask 261120   ;;  %s584_s0 = inlined_call_operand.vmem [shape: bf16[200,32], index: 0, kind: input, shape index: {}]   ;;  %s585_s1 = inlined_call_operand.vmem [shape: bf16[32,128], index: 1, kind: input, shape index: {}]   ;;  %s586_s2 = inlined_call_operand.hbm [shape: f32[200,128], index: 2, kind: output, shape index: {}]  }
   0x1   :  { %v442_v0 = vld [vmem:[%s585_s1] sm:$0xff]   ;;  %377 = vmatprep.subr.bf16.mxu0 %v481_v1  ;;  %433 = vmatprep.subr.bf16.mxu1 %v481_v1  ;;  %v443_v2 = vld [vmem:[%s585_s1 + $0x8] sm:$0xff]   ;;  %v445_v4 = vld [vmem:[%s584_s0 + $0x38] sm:$0xff]  }
   0x2   :  { %378 = vmatpush3.bf16.msra.mxu0 %v442_v0  ;;  %435 = vmatpush3.bf16.msra.mxu1 %v442_v0  ;;  %v444_v3 = vld [vmem:[%s584_s0] sm:$0xff]   ;;  %v446_v5 = vld [vmem:[%s584_s0 + $0x8] sm:$0xff]  }
   0x3   :  { %379 = vmatprep.subr.bf16.mxu0 %v481_v1  ;;  %381 = vmatprep.mubr.msk.bf16.mxu0 %vm482_vm0, %v481_v1  ;;  %v447_v6 = vld [vmem:[%s584_s0 + $0x40] sm:$0xff]  }
   0x4   :  { %434 = vmatprep.subr.bf16.mxu1 %v481_v1  ;;  %409 = vmatprep.mubr.msk.bf16.mxu1 %vm482_vm0, %v481_v1 }
   0x6   :  { %380 = vmatpush3.bf16.msra.mxu0 %v443_v2  ;;  %436 = vmatpush3.bf16.msra.mxu1 %v443_v2 }
   0x9   :  { %382 = vmatmul.mubr.msk.bf16.vlgmr.msra.gmra.mrb[0].mxu0 %vm117_vm1, %v444_v3  ;;  %410 = vmatmul.mubr.msk.bf16.vlgmr.msra.gmra.mrb[0].mxu1 %vm117_vm1, %v445_v4 }
   0xa   :  { %385 = vmatprep.mubr.msk.bf16.mxu0 %vm482_vm0, %v481_v1  ;;  %413 = vmatprep.mubr.msk.bf16.mxu1 %vm482_vm0, %v481_v1 }
   0xb   :  { %7 = vsyncpa [#allocation3], 0  ;;  %v448_v7 = vld [vmem:[%s584_s0 + $0x10] sm:$0xff]   ;;  %v449_v8 = vld [vmem:[%s584_s0 + $0x48] sm:$0xff]  }
   0xc   :  { %v450_v9 = vld [vmem:[%s584_s0 + $0x18] sm:$0xff]   ;;  %v451_v10 = vld [vmem:[%s584_s0 + $0x50] sm:$0xff]   ;;  %v452_v11 = vld [vmem:[%s584_s0 + $0x20] sm:$0xff]  }
   0xd   :  { %v453_v12 = vld [vmem:[%s584_s0 + $0x58] sm:$0xff]   ;;  %v454_v13 = vld [vmem:[%s584_s0 + $0x28] sm:$0xff]   ;;  %v455_v14 = vld [vmem:[%s584_s0 + $0x60] ss:$0 sps:$4 sm:$0xff]  }
   0xe   :  { %v456_v15 = vld [vmem:[%s584_s0 + $0x30] sm:$0xff]   ;;  %s483_s0 = smov [#allocation2]  }
   0xf   :  { %s323_s10 = sshll.u32 %s483_s0, 4  ;;  %s324_s10 = int_to_ptr.vmem [resolvable:$true] %s323_s10 }
  0x10   :  { %s457_s11 = scalar_lea.vmem %s324_s10, 3200  ;;  %p462_p1 = scmp.lt.s32.totalorder %s324_s10, %s324_s10 }
  0x11   :  { %386 = vmatmul.mubr.msk.bf16.gmra.mrb[4].mxu0 %vm117_vm1, %v446_v5  ;;  %414 = vmatmul.mubr.msk.bf16.gmra.mrb[4].mxu1 %vm117_vm1, %v447_v6  ;;  %p458_p0 = scmp.ne.s32.totalorder %s324_s10, %s457_s11  ;;  %p463_p2 = scmp.lt.s32.totalorder %s457_s11, %s457_s11 }
  0x12   :  { %389 = vmatprep.mubr.msk.bf16.mxu0 %vm482_vm0, %v481_v1  ;;  %417 = vmatprep.mubr.msk.bf16.mxu1 %vm482_vm0, %v481_v1 }
  0x13   :  { %p464_p3 = por %p463_p2, %p462_p1 }
  0x15   :  { %p465_p4 = pnand %p464_p3, %p458_p0 }
  0x19   :  { %390 = vmatmul.mubr.msk.bf16.gmra.mrb[8].mxu0 %vm117_vm1, %v448_v7  ;;  %418 = vmatmul.mubr.msk.bf16.gmra.mrb[8].mxu1 %vm117_vm1, %v449_v8 }
  0x1a   :  { %393 = vmatprep.mubr.msk.bf16.mxu0 %vm482_vm0, %v481_v1  ;;  %421 = vmatprep.mubr.msk.bf16.mxu1 %vm482_vm0, %v481_v1 }
  0x21   :  { %394 = vmatmul.mubr.msk.bf16.gmra.mrb[12].mxu0 %vm117_vm1, %v450_v9  ;;  %422 = vmatmul.mubr.msk.bf16.gmra.mrb[12].mxu1 %vm117_vm1, %v451_v10 }
  0x22   :  { %397 = vmatprep.mubr.msk.bf16.mxu0 %vm482_vm0, %v481_v1  ;;  %425 = vmatprep.mubr.msk.bf16.mxu1 %vm482_vm0, %v481_v1 }
  0x29   :  { %398 = vmatmul.mubr.msk.bf16.gmra.mrb[16].mxu0 %vm117_vm1, %v452_v11  ;;  %426 = vmatmul.mubr.msk.bf16.gmra.mrb[16].mxu1 %vm117_vm1, %v453_v12 }
  0x2a   :  { %401 = vmatprep.mubr.msk.bf16.mxu0 %vm482_vm0, %v481_v1  ;;  %429 = vmatprep.mubr.msk.bf16.mxu1 %vm482_vm0, %v481_v1 }
  0x31   :  { %402 = vmatmul.mubr.msk.bf16.gmra.mrb[20].mxu0 %vm117_vm1, %v454_v13  ;;  %430 = vmatmul.mubr.msk.bf16.gmra.mrb[20].mxu1 %vm117_vm1, %v455_v14 }
  0x32   :  { %405 = vmatprep.mubr.msk.bf16.mxu0 %vm482_vm0, %v481_v1 }
  0x39   :  { %406 = vmatmul.mubr.msk.bf16.gmra.mrb[24].mxu0 %vm117_vm1, %v456_v15 }
  0xdc   :  { %v191_v16 = vpop.f32.mrb[0].mxu0  ;;  %v247_v17 = vpop.f32.mrb[0].mxu1 }
  0xdd   :  { %293 = vst [vmem:[#allocation2] sm:$0xff] %v191_v16  ;;  %v383_v18 = vpop.f32.mrb[1].mxu0  ;;  %307 = vst [vmem:[#allocation2 + $0x70] sm:$0xff] %v247_v17  ;;  %v411_v19 = vpop.f32.mrb[1].mxu1 }
  0xde   :  { %v194_v20 = vpop.f32.mrb[2].mxu0  ;;  %v250_v21 = vpop.f32.mrb[2].mxu1 }
  0xdf   :  { %294 = vst [vmem:[#allocation2 + $0x8] sm:$0xff] %v194_v20  ;;  %v384_v22 = vpop.f32.mrb[3].mxu0  ;;  %308 = vst [vmem:[#allocation2 + $0x78] sm:$0xff] %v250_v21  ;;  %v412_v23 = vpop.f32.mrb[3].mxu1 }
  0xe4   :  { %v199_v24 = vpop.f32.mrb[4].mxu0  ;;  %v255_v25 = vpop.f32.mrb[4].mxu1 }
  0xe5   :  { %295 = vst [vmem:[#allocation2 + $0x10] sm:$0xff] %v199_v24  ;;  %v387_v26 = vpop.f32.mrb[5].mxu0  ;;  %309 = vst [vmem:[#allocation2 + $0x80] sm:$0xff] %v255_v25  ;;  %v415_v27 = vpop.f32.mrb[5].mxu1 }
  0xe6   :  { %v202_v28 = vpop.f32.mrb[6].mxu0  ;;  %v258_v29 = vpop.f32.mrb[6].mxu1 }
  0xe7   :  { %296 = vst [vmem:[#allocation2 + $0x18] sm:$0xff] %v202_v28  ;;  %v388_v30 = vpop.f32.mrb[7].mxu0  ;;  %310 = vst [vmem:[#allocation2 + $0x88] sm:$0xff] %v258_v29  ;;  %v416_v31 = vpop.f32.mrb[7].mxu1 }
  0xec   :  { %v207_v32 = vpop.f32.mrb[8].mxu0  ;;  %v263_v33 = vpop.f32.mrb[8].mxu1 }
  0xed   :  { %297 = vst [vmem:[#allocation2 + $0x20] sm:$0xff] %v207_v32  ;;  %v391_v34 = vpop.f32.mrb[9].mxu0  ;;  %311 = vst [vmem:[#allocation2 + $0x90] sm:$0xff] %v263_v33  ;;  %v419_v35 = vpop.f32.mrb[9].mxu1 }
  0xee   :  { %v210_v36 = vpop.f32.mrb[10].mxu0  ;;  %v266_v37 = vpop.f32.mrb[10].mxu1 }
  0xef   :  { %298 = vst [vmem:[#allocation2 + $0x28] sm:$0xff] %v210_v36  ;;  %v392_v38 = vpop.f32.mrb[11].mxu0  ;;  %312 = vst [vmem:[#allocation2 + $0x98] sm:$0xff] %v266_v37  ;;  %v420_v39 = vpop.f32.mrb[11].mxu1 }
  0xf4   :  { %v215_v40 = vpop.f32.mrb[12].mxu0  ;;  %v271_v41 = vpop.f32.mrb[12].mxu1 }
  0xf5   :  { %299 = vst [vmem:[#allocation2 + $0x30] sm:$0xff] %v215_v40  ;;  %v395_v42 = vpop.f32.mrb[13].mxu0  ;;  %313 = vst [vmem:[#allocation2 + $0xa0] sm:$0xff] %v271_v41  ;;  %v423_v43 = vpop.f32.mrb[13].mxu1 }
  0xf6   :  { %v218_v44 = vpop.f32.mrb[14].mxu0  ;;  %v274_v45 = vpop.f32.mrb[14].mxu1 }
  0xf7   :  { %300 = vst [vmem:[#allocation2 + $0x38] sm:$0xff] %v218_v44  ;;  %v396_v46 = vpop.f32.mrb[15].mxu0  ;;  %314 = vst [vmem:[#allocation2 + $0xa8] sm:$0xff] %v274_v45  ;;  %v424_v47 = vpop.f32.mrb[15].mxu1 }
  0xfc   :  { %v223_v48 = vpop.f32.mrb[16].mxu0  ;;  %v279_v49 = vpop.f32.mrb[16].mxu1 }
  0xfd   :  { %301 = vst [vmem:[#allocation2 + $0x40] sm:$0xff] %v223_v48  ;;  %v399_v50 = vpop.f32.mrb[17].mxu0  ;;  %315 = vst [vmem:[#allocation2 + $0xb0] sm:$0xff] %v279_v49  ;;  %v427_v51 = vpop.f32.mrb[17].mxu1 }
  0xfe   :  { %v226_v52 = vpop.f32.mrb[18].mxu0  ;;  %v282_v53 = vpop.f32.mrb[18].mxu1 }
  0xff   :  { %302 = vst [vmem:[#allocation2 + $0x48] sm:$0xff] %v226_v52  ;;  %v400_v54 = vpop.f32.mrb[19].mxu0  ;;  %316 = vst [vmem:[#allocation2 + $0xb8] sm:$0xff] %v282_v53  ;;  %v428_v55 = vpop.f32.mrb[19].mxu1 }
 0x104   :  { %v231_v56 = vpop.f32.mrb[20].mxu0  ;;  %v287_v57 = vpop.f32.mrb[20].mxu1 }
 0x105   :  { %303 = vst [vmem:[#allocation2 + $0x50] sm:$0xff] %v231_v56  ;;  %v403_v58 = vpop.f32.mrb[21].mxu0  ;;  %317 = vst [vmem:[#allocation2 + $0xc0] sm:$0xff] %v287_v57  ;;  %v431_v59 = vpop.f32.mrb[21].mxu1 }
 0x106   :  { %v234_v60 = vpop.f32.mrb[22].mxu0  ;;  %v290_v61 = vpop.f32.mrb[22].mxu1 }
 0x107   :  { %304 = vst [vmem:[#allocation2 + $0x58] sm:$0xff] %v234_v60  ;;  %v404_v62 = vpop.f32.mrb[23].mxu0  ;;  %v432_v63 = vpop.f32.mrb[23].mxu1 }
 0x10c   :  { %v239_v0 = vpop.f32.mrb[24].mxu0 }
 0x10d   :  { %305 = vst [vmem:[#allocation2 + $0x60] sm:$0xff] %v239_v0  ;;  %v407_v1 = vpop.f32.mrb[25].mxu0 }
 0x10e   :  { %v242_v2 = vpop.f32.mrb[26].mxu0 }
 0x10f   :  { %306 = vst [vmem:[#allocation2 + $0x68] sm:$0xff] %v242_v2  ;;  %v408_v3 = vpop.f32.mrb[27].mxu0 }
 0x110   :  { %468 = shalt.err (!%p465_p4)
}
 0x111   :  { %s469_s14 = scalar_lea.hbm %s586_s2, 3200 }
 0x112   :  { %p470_p5 = scmp.ne.s32.totalorder %s586_s2, %s469_s14  ;;  %p473_p6 = scmp.lt.u32.totalorder %s469_s14, %s586_s2 }
 0x114   :  { %p475_p7 = pnand %p473_p6, %p470_p5 }
 0x116   :  { %478 = shalt.err (!%p475_p7)
}
 0x117   :  { %s484_s18 = smov 128   ;;  %s485_s19 = smov 8  }
 0x118   :  { %329 = dma.vmem_to_hbm [thread:$0]  %s324_s10, 3200, %s586_s2, [#allocation3], %s484_s18, %s484_s18, %s485_s19  }
 0x119   :  { %479 = dma.done.wait [#allocation3], 3200  }
 0x11a   :  { %480 = vsyncadd [#allocation3], 4294964096 }
 0x11b   :  { %333 = vsyncpa [#allocation3], 1 }

</bundles_post_ra>
